<compile_context>
chip_gen: v7x
topology: tpu7x:2x2x1
jax: 0.10.0
libtpu: 0.0.40
codegen_flags: <defaults>
</compile_context>

<pallas_src>
from math import gcd

import jax
import jax.numpy as jnp
from jax.experimental import pallas as pl
from jax.experimental.pallas import tpu as pltpu


def _pool_tanh(w_ref, b_ref, p_ref, q):
    """(Cout,K)x(K,4Q) matmul -> 2x2 maxpool over parity lane-slices -> +bias -> tanh."""
    acc = jnp.dot(w_ref[...], p_ref[0], preferred_element_type=jnp.float32)
    pooled = jnp.maximum(
        jnp.maximum(acc[:, 0 * q:1 * q], acc[:, 1 * q:2 * q]),
        jnp.maximum(acc[:, 2 * q:3 * q], acc[:, 3 * q:4 * q]))
    # bias is constant over each 2x2 window and tanh is monotonic, so pooling first,
    # then bias, then tanh is exact and does 4x less VPU/EUP work.
    return jnp.tanh(pooled + b_ref[...])


def _netdropout_kernel_eval(w_ref, b_ref, p_ref, o_ref):
    """Eval mode (Dropout2d == identity).

    w_ref: (Cout, 9*Cin)    -- conv weight, K ordered (dy, dx, cin)
    b_ref: (Cout, 1)        -- conv bias
    p_ref: (1, 9*Cin, 4*Q)  -- im2col patches, lanes ordered (hp, wp, b, ho, wo)
    o_ref: (1, Cout, Q)     -- pooled / activated output, lanes ordered (b, ho, wo)
    """
    q = o_ref.shape[-1]
    o_ref[0] = _pool_tanh(w_ref, b_ref, p_ref, q).astype(o_ref.dtype)


def _netdropout_kernel_train(w_ref, b_ref, m_ref, p_ref, o_ref):
    """Training mode: additionally applies the Dropout2d per-(sample, channel) scale.

    m_ref: (1, Cout, Q) -- keep/(1-p) scale broadcast over each sample's pixels.
    """
    q = o_ref.shape[-1]
    o_ref[0] = (_pool_tanh(w_ref, b_ref, p_ref, q) * m_ref[0]).astype(o_ref.dtype)


def _choose_batch_block(N, Hout, Wout, K, H, W):
    """Pick batch block B: lane-dense output (Q % 128 == 0) when possible, ~4 MiB patch
    tiles, and >= 2 grid steps when the batch allows (v7x dual TensorCore)."""
    hw = Hout * Wout
    per_sample_bytes = ((K + 7) // 8) * 8 * H * W * 4   # padded-K im2col bytes / sample
    b_cap = max(1, (4 * 1024 * 1024) // per_sample_bytes)
    g = 128 // gcd(hw, 128)                             # smallest B giving Q % 128 == 0
    if g <= b_cap and g <= N:
        n_units = pl.cdiv(N, g)
        B = g * max(1, min(b_cap // g, pl.cdiv(n_units, 2)))
    else:
        B = 1 if N <= 1 else max(1, min(b_cap, pl.cdiv(N, 2)))
    return B


def net_dropout_forward(x_nchw, weight, bias, *, dropout_prob=0.4,
                        training=False, rng_key=None):
    """Forward pass of NetDropout.

    x_nchw : (N, Cin, H, W) float32 (PyTorch NCHW)
    weight : (Cout, Cin, 3, 3) float32 (nn.Conv2d layout)
    bias   : (Cout,) float32
    Returns (N, Cout, H//2, W//2) float32 (NCHW, matching the PyTorch module).
    """
    N, Cin, H, W = x_nchw.shape
    Cout = weight.shape[0]
    assert weight.shape == (Cout, Cin, 3, 3)
    assert H % 2 == 0 and W % 2 == 0
    Hout, Wout = H // 2, W // 2
    K = 9 * Cin

    B = _choose_batch_block(N, Hout, Wout, K, H, W)
    grid_b = pl.cdiv(N, B)
    Npad = grid_b * B
    Q = B * Hout * Wout

    x = x_nchw.astype(jnp.float32)
    # zero-pad: batch up to Npad, spatial by 1 on each side (conv padding=1).
    xp = jnp.pad(x, ((0, Npad - N), (0, 0), (1, 1), (1, 1)))

    # --- wrapper-side im2col with pooling-friendly pixel ordering -------------------
    # K axis ordered (dy, dx, cin); M axis ordered (h_parity, w_parity, b, ho, wo) so the
    # kernel's 2x2 max-pool is a max over four aligned, contiguous lane slices.
    taps = [xp[:, :, dy:dy + H, dx:dx + W] for dy in range(3) for dx in range(3)]
    arr = jnp.stack(taps, axis=0)                               # (9, Npad, Cin, H, W)
    arr = arr.reshape(9, grid_b, B, Cin, Hout, 2, Wout, 2)      # tap,gb,b,cin,ho,hp,wo,wp
    arr = arr.transpose(1, 0, 3, 5, 7, 2, 4, 6)                 # gb,tap,cin,hp,wp,b,ho,wo
    patches = arr.reshape(grid_b, K, B * H * W)                 # (gb, K, 4*Q)

    # conv weight -> (Cout, K) with K ordered (dy, dx, cin); bias -> (Cout, 1)
    w2 = jnp.transpose(weight, (0, 2, 3, 1)).reshape(Cout, K).astype(jnp.float32)
    b2 = bias.reshape(Cout, 1).astype(jnp.float32)

    w_spec = pl.BlockSpec((Cout, K), lambda i: (0, 0))
    b_spec = pl.BlockSpec((Cout, 1), lambda i: (0, 0))
    p_spec = pl.BlockSpec((1, K, 4 * Q), lambda i: (i, 0, 0))
    o_spec = pl.BlockSpec((1, Cout, Q), lambda i: (i, 0, 0))
    out_shape = jax.ShapeDtypeStruct((grid_b, Cout, Q), jnp.float32)
    cparams = pltpu.CompilerParams(dimension_semantics=("parallel",))

    if training:
        # --- Dropout2d: independent per-(sample, channel) keep mask, scaled by 1/(1-p).
        if rng_key is None:
            rng_key = jax.random.PRNGKey(0)
        keep = jax.random.bernoulli(rng_key, 1.0 - dropout_prob, (N, Cout))
        mask_nc = keep.astype(jnp.float32) / (1.0 - dropout_prob)
        mask_nc = jnp.pad(mask_nc, ((0, Npad - N), (0, 0)), constant_values=1.0)
        m_arr = mask_nc.reshape(grid_b, B, Cout).transpose(0, 2, 1)      # (gb, Cout, B)
        m_arr = jnp.broadcast_to(m_arr[:, :, :, None],
                                 (grid_b, Cout, B, Hout * Wout))
        m_arr = m_arr.reshape(grid_b, Cout, Q)

        out = pl.pallas_call(
            _netdropout_kernel_train,
            out_shape=out_shape,
            grid_spec=pltpu.PrefetchScalarGridSpec(
                num_scalar_prefetch=0,
                grid=(grid_b,),
                in_specs=[w_spec, b_spec,
                          pl.BlockSpec((1, Cout, Q), lambda i: (i, 0, 0)),
                          p_spec],
                out_specs=o_spec,
            ),
            compiler_params=cparams,
        )(w2, b2, m_arr, patches)
    else:
        # Eval mode: Dropout2d is identity -> mask-free kernel, no mask DMA at all.
        out = pl.pallas_call(
            _netdropout_kernel_eval,
            out_shape=out_shape,
            grid_spec=pltpu.PrefetchScalarGridSpec(
                num_scalar_prefetch=0,
                grid=(grid_b,),
                in_specs=[w_spec, b_spec, p_spec],
                out_specs=o_spec,
            ),
            compiler_params=cparams,
        )(w2, b2, patches)

    # (gb, Cout, B, Hout, Wout) -> NCHW (N, Cout, Hout, Wout)
    out = out.reshape(grid_b, Cout, B, Hout, Wout)
    out = out.transpose(0, 2, 1, 3, 4).reshape(Npad, Cout, Hout, Wout)
    return out[:N]


def _reference(x, weight, bias, mask_nc):
    """Pure-JAX reference: conv -> tanh -> maxpool 2x2 -> per-(sample,channel) scale."""
    y = jax.lax.conv_general_dilated(
        x.astype(jnp.float32), weight.astype(jnp.float32),
        window_strides=(1, 1), padding=((1, 1), (1, 1)),
        dimension_numbers=("NCHW", "OIHW", "NCHW"))
    y = y + bias[None, :, None, None]
    y = jnp.tanh(y)
    y = jax.lax.reduce_window(y, -jnp.inf, jax.lax.max,
                              (1, 1, 2, 2), (1, 1, 2, 2), "VALID")
    return y * mask_nc[:, :, None, None]


if __name__ == "__main__":
    # CIFAR-like small example: 3 input channels, 16x16 spatial, nchans1=10 (module default).
    N, Cin, H, W = 2, 3, 16, 16
    Cout = 10

    key = jax.random.PRNGKey(0)
    kx, kw, kb, kd = jax.random.split(key, 4)

    x = jax.random.normal(kx, (N, Cin, H, W), dtype=jnp.float32)

    # Deterministic Conv2d-style init (uniform in +/- 1/sqrt(fan_in)).
    fan_in = Cin * 3 * 3
    bound = 1.0 / (fan_in ** 0.5)
    weight = jax.random.uniform(kw, (Cout, Cin, 3, 3), jnp.float32, -bound, bound)
    bias = jax.random.uniform(kb, (Cout,), jnp.float32, -bound, bound)

    # --- eval mode (Dropout2d is identity) ------------------------------------------
    out = net_dropout_forward(x, weight, bias, dropout_prob=0.4, training=False)
    out = jax.block_until_ready(out)
    assert out.shape == (N, Cout, H // 2, W // 2), out.shape

    ref = _reference(x, weight, bias, jnp.ones((N, Cout), jnp.float32))
    err = float(jnp.max(jnp.abs(out - ref)))
    assert err < 5e-2, f"eval max abs error {err}"

    # --- training mode (per-(sample, channel) Dropout2d mask) ------------------------
    p_drop = 0.4
    out_tr = net_dropout_forward(x, weight, bias, dropout_prob=p_drop,
                                 training=True, rng_key=kd)
    out_tr = jax.block_until_ready(out_tr)
    keep = jax.random.bernoulli(kd, 1.0 - p_drop, (N, Cout))
    mask_nc = keep.astype(jnp.float32) / (1.0 - p_drop)
    ref_tr = _reference(x, weight, bias, mask_nc)
    err_tr = float(jnp.max(jnp.abs(out_tr - ref_tr)))
    assert err_tr < 5e-2, f"train max abs error {err_tr}"

    print("KERNEL_OK")
</pallas_src>

<mosaic_0001>
module attributes {stable_mosaic.version = 11 : i64} {
  func.func @_netdropout_kernel_eval(%arg0: i32, %arg1: memref<10x27xf32, #tpu.memory_space<vmem>>, %arg2: memref<10x1xf32, #tpu.memory_space<vmem>>, %arg3: memref<1x27x512xf32, #tpu.memory_space<vmem>>, %arg4: memref<1x10x128xf32, #tpu.memory_space<vmem>>) attributes {dimension_semantics = [#tpu.dimension_semantics<parallel>], iteration_bounds = array<i64: 1>, scalar_prefetch = 0 : i64, scratch_operands = 0 : i64, tpu.core_type = #tpu.core_type<tc>, window_params = [{pipeline_mode = #tpu.pipeline_mode<synchronous>, transform_indices = @transform_0, window_bounds = array<i64: 10, 27>}, {pipeline_mode = #tpu.pipeline_mode<synchronous>, transform_indices = @transform_1, window_bounds = array<i64: 10, 1>}, {transform_indices = @transform_2, window_bounds = array<i64: 1, 27, 512>}, {transform_indices = @transform_3, window_bounds = array<i64: 1, 10, 128>}]} {
    %c0 = arith.constant 0 : index
    %c0_0 = arith.constant 0 : index
    %0 = vector.load %arg1[%c0, %c0_0] : memref<10x27xf32, #tpu.memory_space<vmem>>, vector<10x27xf32>
    %c0_1 = arith.constant 0 : index
    %c0_2 = arith.constant 0 : index
    %c0_3 = arith.constant 0 : index
    %1 = vector.load %arg3[%c0_1, %c0_2, %c0_3] : memref<1x27x512xf32, #tpu.memory_space<vmem>>, vector<1x27x512xf32>
    %2 = vector.shape_cast %1 : vector<1x27x512xf32> to vector<27x512xf32>
    %cst = arith.constant dense<0.000000e+00> : vector<10x512xf32>
    %3 = tpu.matmul %0, %2, %cst {dimension_numbers = #tpu.dot_dimension_numbers<[1], [0], [0], [1], [0, 0, 1, 1], [], []>} : vector<10x27xf32>, vector<27x512xf32>, vector<10x512xf32> -> vector<10x512xf32>
    %4 = vector.extract_strided_slice %3 {offsets = [0, 0], sizes = [10, 128], strides = [1, 1]} : vector<10x512xf32> to vector<10x128xf32>
    %5 = vector.extract_strided_slice %3 {offsets = [0, 128], sizes = [10, 128], strides = [1, 1]} : vector<10x512xf32> to vector<10x128xf32>
    %6 = arith.maximumf %4, %5 : vector<10x128xf32>
    %7 = vector.extract_strided_slice %3 {offsets = [0, 256], sizes = [10, 128], strides = [1, 1]} : vector<10x512xf32> to vector<10x128xf32>
    %8 = vector.extract_strided_slice %3 {offsets = [0, 384], sizes = [10, 128], strides = [1, 1]} : vector<10x512xf32> to vector<10x128xf32>
    %9 = arith.maximumf %7, %8 : vector<10x128xf32>
    %10 = arith.maximumf %6, %9 : vector<10x128xf32>
    %c0_4 = arith.constant 0 : index
    %c0_5 = arith.constant 0 : index
    %11 = vector.load %arg2[%c0_4, %c0_5] : memref<10x1xf32, #tpu.memory_space<vmem>>, vector<10x1xf32>
    %12 = vector.broadcast %11 : vector<10x1xf32> to vector<10x128xf32>
    %13 = arith.addf %10, %12 : vector<10x128xf32>
    %14 = math.tanh %13 : vector<10x128xf32>
    %c0_6 = arith.constant 0 : index
    %c0_7 = arith.constant 0 : index
    %c0_8 = arith.constant 0 : index
    %15 = vector.load %arg4[%c0_6, %c0_7, %c0_8] : memref<1x10x128xf32, #tpu.memory_space<vmem>>, vector<1x10x128xf32>
    %16 = vector.shape_cast %15 : vector<1x10x128xf32> to vector<10x128xf32>
    %17 = vector.shape_cast %14 : vector<10x128xf32> to vector<1x10x128xf32>
    tpu.vector_store %arg4[%c0_6, %c0_7, %c0_8], %17 {strides = array<i32>} : memref<1x10x128xf32, #tpu.memory_space<vmem>>, vector<1x10x128xf32>,
    return
  }
  func.func @transform_0(%arg0: i32) -> (i32, i32) {
    %c0_i32 = arith.constant 0 : i32
    %c0_i32_0 = arith.constant 0 : i32
    %c0_i32_1 = arith.constant 0 : i32
    return %c0_i32, %c0_i32_0 : i32, i32
  }
  func.func @transform_1(%arg0: i32) -> (i32, i32) {
    %c0_i32 = arith.constant 0 : i32
    %c0_i32_0 = arith.constant 0 : i32
    %c0_i32_1 = arith.constant 0 : i32
    return %c0_i32, %c0_i32_0 : i32, i32
  }
  func.func @transform_2(%arg0: i32) -> (i32, i32, i32) {
    %c0_i32 = arith.constant 0 : i32
    %c0_i32_0 = arith.constant 0 : i32
    %c0_i32_1 = arith.constant 0 : i32
    return %arg0, %c0_i32, %c0_i32_0 : i32, i32, i32
  }
  func.func @transform_3(%arg0: i32) -> (i32, i32, i32) {
    %c0_i32 = arith.constant 0 : i32
    %c0_i32_0 = arith.constant 0 : i32
    %c0_i32_1 = arith.constant 0 : i32
    return %arg0, %c0_i32, %c0_i32_0 : i32, i32, i32
  }
}

</mosaic_0001>

<bundles_post_ra>
// kernel: tpu_custom_call.1
= control target key start
LH: loop header
LB: loop body
LE: loop exit
PB: predicated region body
PF: predicated region fallthrough
CT: control target
= control target key end

     0   :  { %vm39_vm0 = vcmask 1042432   ;;  %v270_v3 = vmov 0.0   ;;  %v271_v8 = vmov 0   ;;  %vm272_vm1 = vmmov 1   ;;  %s372_s2 = inlined_call_operand.vmem [shape: f32[1,27,512], index: 2, kind: input, shape index: {}]   ;;  %s373_s1 = inlined_call_operand.vmem [shape: f32[10,1], index: 1, kind: input, shape index: {}]   ;;  %s374_s0 = inlined_call_operand.vmem [shape: f32[10,27], index: 0, kind: input, shape index: {}]   ;;  %s375_s3 = inlined_call_operand.vmem [shape: f32[1,10,128], index: 3, kind: output, shape index: {}]  }
   0x1   :  { %v17_v0 = vld [vmem:[%s372_s2 + $0x8] sm:$0xff]  ;;  %v19_v2 = vld [vmem:[%s372_s2 + $0x18] sm:$0xff]  ;;  %116 = vmatprep.mubr.f32.mxu0 %v270_v3  ;;  %193 = vmatprep.mubr.f32.mxu1 %v270_v3  ;;  %v16_v6 = vld [vmem:[%s372_s2] sm:$0xff]  ;;  %vm32_vm3 = vcmask 220160  }
   0x2   :  { %v21_v1 = vld [vmem:[%s372_s2 + $0x28] sm:$0xff]  ;;  %v23_v5 = vld [vmem:[%s372_s2 + $0x38] sm:$0xff]  ;;  %v20_v7 = vld [vmem:[%s372_s2 + $0x20] sm:$0xff]  ;;  %265 = vset.pattern.permute.xlu0 %v271_v8 }
   0x3   :  { %v242_v4 = vpack.c.bf16 %v21_v1, %v17_v0  ;;  %v252_v9 = vpack.c.bf16 %v23_v5, %v19_v2  ;;  %v244_v10 = vpack.c.bf16 %v20_v7, %v16_v6  ;;  %v18_v11 = vld [vmem:[%s372_s2 + $0x10] sm:$0xff]  ;;  %v25_v13 = vld [vmem:[%s372_s2 + $0x48] sm:$0xff]  ;;  %vm324_vm2 = vmpackc.low %vm39_vm0, %vm272_vm1 }
   0x4   :  { %v22_v12 = vld [vmem:[%s372_s2 + $0x30] sm:$0xff]  ;;  %v29_v15 = vld [vmem:[%s372_s2 + $0x68] sm:$0x7]  ;;  %v27_v17 = vld [vmem:[%s372_s2 + $0x58] sm:$0xff] }
   0x5   :  { %243 = vmatprep.subr.bf16.mxu0 %v242_v4  ;;  %v254_v14 = vpack.c.bf16 %v22_v12, %v18_v11  ;;  %253 = vmatprep.subr.bf16.mxu1 %v252_v9  ;;  %v246_v18 = vpack.c.bf16 %v29_v15, %v25_v13  ;;  %v31_v19 = vld [vmem:[%s372_s2 + $0x78] sm:$0x7]  ;;  %v24_v20 = vld [vmem:[%s372_s2 + $0x40] sm:$0xff]  ;;  %v26_v24 = vld [vmem:[%s372_s2 + $0x50] sm:$0xff] }
   0x6   :  { %245 = vmatpush1.bf16.msra.mxu0 %v244_v10  ;;  %v28_v21 = vld [vmem:[%s372_s2 + $0x60] sm:$0x7]  ;;  %v256_v22 = vpack.c.bf16 %v31_v19, %v27_v17  ;;  %v30_v25 = vld [vmem:[%s372_s2 + $0x70] sm:$0x7]  ;;  %v213_v29 = vld [vmem:[%s373_s1 + $0x8] sm:$0x3] }
   0x7   :  { %255 = vmatpush1.bf16.msra.mxu1 %v254_v14  ;;  %v249_v23 = vpack.c.bf16 %v28_v21, %v24_v20  ;;  %248 = vmatprep.subr.msk.bf16.mxu0 %vm324_vm2, %v246_v18  ;;  %v259_v26 = vpack.c.bf16 %v30_v25, %v26_v24  ;;  %v212_v27 = vld [vmem:[%s373_s1] sm:$0xff]  ;;  %v15_v30 = vld [vmem:[%s374_s0 + $0x8] sm:$0x3] }
   0x8   :  { %258 = vmatprep.subr.msk.bf16.mxu1 %vm324_vm2, %v256_v22  ;;  %216 = vperm.xlu0 %265, %v212_v27   ;;  %v14_v28 = vld [vmem:[%s374_s0] sm:$0xff] }
   0xa   :  { %251 = vmatpush1.bf16.msk.msra.mxu0 %vm324_vm2, %v249_v23 }
   0xb   :  { %261 = vmatpush1.bf16.msk.msra.mxu1 %vm324_vm2, %v259_v26 }
   0xc   :  { %221 = vperm.xlu0 %265, %v213_v29  }
   0xd   :  { %236 = vmatmul.mubr.msk.f32.vlgmr.msra.gmra.mrb[0].mxu0 %vm32_vm3, %v14_v28 }
   0xe   :  { %240 = vmatmul.mubr.msk.f32.vlgmr.msra.gmra.mrb[0].mxu1 %vm32_vm3, %v14_v28  ;;  %122 = vmatprep.mubr.f32.mxu0 %v270_v3 }
   0xf   :  { %199 = vmatprep.mubr.f32.mxu1 %v270_v3 }
  0x11   :  { %237 = vmatmul.mubr.msk.f32.gmra.mrb[2].mxu0 %vm32_vm3, %v15_v30 }
  0x12   :  { %241 = vmatmul.mubr.msk.f32.gmra.mrb[2].mxu1 %vm32_vm3, %v15_v30 }
  0x87   :  { %v217_v37 = vpop.permute.xlu0 %216 }
  0x8b   :  { %v222_v47 = vpop.permute.xlu0 %221 }
  0xe0   :  { %v118_v31 = vpop.f32.mrb[0].mxu0 }
  0xe1   :  { %v195_v32 = vpop.f32.mrb[0].mxu1  ;;  %v120_v33 = vpop.f32.mrb[1].mxu0 }
  0xe2   :  { %v206_v34 = vmax.f32 %v118_v31, %v120_v33  ;;  %v197_v35 = vpop.f32.mrb[1].mxu1 }
  0xe3   :  { %v208_v36 = vmax.f32 %v195_v32, %v197_v35 }
  0xe4   :  { %v124_v38 = vpop.f32.mrb[2].mxu0 }
  0xe5   :  { %v210_v39 = vmax.f32 %v206_v34, %v208_v36  ;;  %v201_v40 = vpop.f32.mrb[2].mxu1  ;;  %v126_v41 = vpop.f32.mrb[3].mxu0 }
  0xe6   :  { %v207_v42 = vmax.f32 %v124_v38, %v126_v41  ;;  %v203_v43 = vpop.f32.mrb[3].mxu1 }
  0xe7   :  { %v224_v44 = vadd.f32 %v217_v37, %v210_v39  ;;  %v209_v45 = vmax.f32 %v201_v40, %v203_v43 }
  0xe9   :  { %266 = vtanh.f32 %v224_v44  ;;  %v211_v46 = vmax.f32 %v207_v42, %v209_v45 }
  0xeb   :  { %v225_v48 = vadd.f32 %v222_v47, %v211_v46 }
  0xed   :  { %268 = vtanh.f32 %v225_v48 }
  0xf3   :  { %v267_v49 = vpop.eup %266 }
  0xf4   :  { %228 = vst [vmem:[%s375_s3] sm:$0xff] %v267_v49 }
  0xf7   :  { %v269_v50 = vpop.eup %268 }
  0xf8   :  { %229 = vst [vmem:[%s375_s3 + $0x8] sm:$0x3] %v269_v50 }

</bundles_post_ra>
